<compile_context>
chip_gen: v6e
topology: v6e:2x2x1
jax: 0.10.0
libtpu: 0.0.40
codegen_flags: <defaults>
</compile_context>

<pallas_src>
import jax
import jax.numpy as jnp
from jax.experimental import pallas as pl
from jax.experimental.pallas import tpu as pltpu

_LANES = 128                          # full vreg lane width -> unmasked vst
_SMALL_BYTES = 512 * 1024             # below this, fused XLA maximum wins
_TARGET_BLOCK_BYTES = 4 * 1024 * 1024  # ~4 MiB per buffer, any dtype
_VMEM_LIMIT_BYTES = 32 * 1024 * 1024   # explicit: covers v5e's 16 MiB default


def _clamp_min0_kernel(x_ref, o_ref):
    # Elementwise hot path: clamp(x, min=0).
    x = x_ref[...]
    o_ref[...] = jnp.maximum(x, jnp.zeros((), dtype=x.dtype))


def _round_up(v, m):
    return ((v + m - 1) // m) * m


def cubic_der2(x, *, donate=False):
    """CubicDer2.forward(x) == clamp(x, min=0), elementwise.

    Large, lane-aligned inputs run through a Pallas TPU kernel over a
    lane-dense (rows, 128) slab.  Tiny inputs and sizes that are not a
    multiple of 128 go through plain jnp.maximum: for a purely mem-bound
    elementwise op XLA's fused kernel is already at the HBM roofline, and any
    pad/slice/concat plumbing around the custom call only adds full-tensor
    HBM copies.

    Set donate=True only when the caller donates `x` (e.g. via
    jax.jit(..., donate_argnums=...)); the output is then aliased onto the
    input buffer so no second full-size HBM allocation is made.
    """
    total = x.size
    if total == 0:
        return x

    itemsize = jnp.dtype(x.dtype).itemsize
    nbytes = total * itemsize

    # Fast paths: tiny tensors (custom-call launch + lost fusion dominate) and
    # ragged sizes (avoid the pad/slice HBM-copy tax entirely).
    if nbytes < _SMALL_BYTES or total % _LANES != 0:
        return jnp.maximum(x, jnp.zeros((), dtype=x.dtype))

    rows = total // _LANES
    x2 = x.reshape(rows, _LANES)  # contiguous reshape: free, no HBM copy

    # Block sizing in bytes so every dtype lands on the large-block roofline
    # plateau, but never fewer than 2 grid steps so both of v7x's TensorCores
    # get work and pipeline start/drain is hidden.
    max_block_rows = max(8, _TARGET_BLOCK_BYTES // (_LANES * itemsize))
    block_rows = min(max_block_rows, pl.cdiv(rows, 2))
    block_rows = min(rows, _round_up(block_rows, 8))  # sublane (8) alignment
    grid = (pl.cdiv(rows, block_rows),)

    # NOTE: when rows % block_rows != 0 the last block's out-of-bounds reads
    # see garbage and its out-of-bounds writes are dropped.  That is safe ONLY
    # because this op is elementwise; do not inherit this for reductions or
    # NaN-/overflow-sensitive ops.
    out = pl.pallas_call(
        _clamp_min0_kernel,
        out_shape=jax.ShapeDtypeStruct((rows, _LANES), x.dtype),
        grid_spec=pltpu.PrefetchScalarGridSpec(
            num_scalar_prefetch=0,
            grid=grid,
            in_specs=[pl.BlockSpec((block_rows, _LANES), lambda i: (i, 0))],
            out_specs=pl.BlockSpec((block_rows, _LANES), lambda i: (i, 0)),
        ),
        compiler_params=pltpu.CompilerParams(
            dimension_semantics=("parallel",),
            vmem_limit_bytes=_VMEM_LIMIT_BYTES,
        ),
        cost_estimate=pl.CostEstimate(
            flops=total, transcendentals=0, bytes_accessed=2 * nbytes),
        input_output_aliases=({0: 0} if donate else {}),
    )(x2)

    return out.reshape(x.shape)


if __name__ == "__main__":
    key = jax.random.PRNGKey(0)
    k1, k2, k3, k4 = jax.random.split(key, 4)

    # 1) Module-spec shape (NCHW, batch=2, channels=4, 16x16): below the
    #    Pallas threshold -> fused-XLA fast path.
    x_small = jax.random.normal(k1, (2, 4, 16, 16), dtype=jnp.float32)
    y_small = jax.block_until_ready(cubic_der2(x_small))
    assert y_small.shape == x_small.shape and y_small.dtype == x_small.dtype
    assert jnp.allclose(y_small, jnp.maximum(x_small, 0.0)), "small-path mismatch"

    # 2) Pallas-kernel path, f32 (2 MiB, multiple of 128): grid of >= 2 blocks.
    x_f32 = jax.random.normal(k2, (2, 4, 256, 256), dtype=jnp.float32)
    y_f32 = jax.block_until_ready(cubic_der2(x_f32))
    assert y_f32.shape == x_f32.shape and y_f32.dtype == x_f32.dtype
    assert jnp.allclose(y_f32, jnp.maximum(x_f32, 0.0)), "f32 kernel mismatch"

    # 3) Pallas-kernel path, bf16: exercises byte-based block sizing.
    x_bf16 = jax.random.normal(k3, (2, 4, 256, 256), dtype=jnp.bfloat16)
    y_bf16 = jax.block_until_ready(cubic_der2(x_bf16))
    assert y_bf16.dtype == x_bf16.dtype
    assert jnp.array_equal(
        y_bf16, jnp.maximum(x_bf16, jnp.zeros((), jnp.bfloat16))), "bf16 mismatch"

    # 4) Ragged size (not a multiple of 128 lanes): fused-XLA fallback,
    #    no pad/slice copies.
    x_rag = jax.random.normal(k4, (4100, 130), dtype=jnp.float32)
    y_rag = jax.block_until_ready(cubic_der2(x_rag))
    assert y_rag.shape == x_rag.shape
    assert jnp.allclose(y_rag, jnp.maximum(x_rag, 0.0)), "ragged-path mismatch"

    print("KERNEL_OK")
</pallas_src>

<mosaic_0001>
module attributes {stable_mosaic.version = 11 : i64} {
  func.func @_clamp_min0_kernel(%arg0: i32, %arg1: memref<2048x128xf32, #tpu.memory_space<vmem>>, %arg2: memref<2048x128xf32, #tpu.memory_space<vmem>>) attributes {dimension_semantics = [#tpu.dimension_semantics<parallel>], iteration_bounds = array<i64: 2>, scalar_prefetch = 0 : i64, scratch_operands = 0 : i64, tpu.core_type = #tpu.core_type<tc>, window_params = [{transform_indices = @transform_0, window_bounds = array<i64: 2048, 128>}, {transform_indices = @transform_1, window_bounds = array<i64: 2048, 128>}]} {
    %c0 = arith.constant 0 : index
    %c0_0 = arith.constant 0 : index
    %0 = vector.load %arg1[%c0, %c0_0] : memref<2048x128xf32, #tpu.memory_space<vmem>>, vector<2048x128xf32>
    %cst = arith.constant 0.000000e+00 : f32
    %1 = vector.broadcast %cst : f32 to vector<2048x128xf32>
    %2 = arith.maximumf %0, %1 : vector<2048x128xf32>
    %c0_1 = arith.constant 0 : index
    %c0_2 = arith.constant 0 : index
    %3 = vector.load %arg2[%c0_1, %c0_2] : memref<2048x128xf32, #tpu.memory_space<vmem>>, vector<2048x128xf32>
    tpu.vector_store %arg2[%c0_1, %c0_2], %2 {strides = array<i32>} : memref<2048x128xf32, #tpu.memory_space<vmem>>, vector<2048x128xf32>,
    return
  }
  func.func @transform_0(%arg0: i32) -> (i32, i32) {
    %c0_i32 = arith.constant 0 : i32
    %c0_i32_0 = arith.constant 0 : i32
    return %arg0, %c0_i32 : i32, i32
  }
  func.func @transform_1(%arg0: i32) -> (i32, i32) {
    %c0_i32 = arith.constant 0 : i32
    %c0_i32_0 = arith.constant 0 : i32
    return %arg0, %c0_i32 : i32, i32
  }
}

</mosaic_0001>

<bundles_post_ra>
// kernel: tpu_custom_call.1
= control target key start
LH: loop header
LB: loop body
LE: loop exit
PB: predicated region body
PF: predicated region fallthrough
CT: control target
= control target key end

     0   :  { %6 = vsyncpa [#allocation3], 0  ;;  %s1843_s0 = inlined_call_operand.hbm [shape: f32[4096,128], index: 0, kind: input, shape index: {}]   ;;  %s1844_s1 = inlined_call_operand.hbm [shape: f32[4096,128], index: 1, kind: output, shape index: {}]  }
   0x1   :  { %8 = vsyncpa [#allocation3 + $0x1], 0 }
   0x2   :  { %9 = vsyncpa [#allocation4], 0 }
   0x3   :  { %11 = vsyncpa [#allocation4 + $0x1], 0  ;;  %s1168_s6 = smov 0   ;;  %s1170_s7 = smov 0  }
   0x4   :  { %s1172_s8 = smov 0   ;;  %s1174_s9 = smov 0  }
   0x5 LB: > { %s1189_s10 = sadd.s32 4294967295, %s1150_s9   ;;  %s992_s11 = sadd.s32 4294967294, %s1150_s9   ;;  %s1150_s9 = sphi %s1174_s9, %s1859_s9   ;;  %s1146_s8 = sphi %s1172_s8, %s1858_s8   ;;  %s1142_s7 = sphi %s1170_s7, %s1857_s7   ;;  %s1138_s6 = sphi %s1168_s6, %s1856_s6  }
   0x6   : > { %s1193_s12 = sadd.s32 1, %s1150_s9   ;;  %s24_s13 = sadd.s32 1, %s1146_s8 }
   0x7   : > { %s21_s14 = ssub.s32 %s1150_s9, %s1193_s12  ;;  %p31_p0 = scmp.ne.s32.totalorder %s1146_s8, %s1142_s7 }
   0x8   : > { %p22_p1 = scmp.eq.s32.totalorder %s21_s14, 0  ;;  %p32_p2 = scmp.eq.s32.totalorder %s1150_s9, 0 }
   0x9   : > { %p37_p3 = scmp.ne.s32.totalorder %s1142_s7, %s1138_s6  ;;  %p38_p4 = scmp.eq.s32.totalorder %s1189_s10, 0 }
   0xa   : > { %s1205_s15 = scalar_select %p22_p1, %s1146_s8, %s24_s13  }
   0xb   : > { %p1207_p5 = por %p32_p2, %p31_p0  ;;  %p1211_p6 = por %p38_p4, %p37_p3 }
   0xc   : > { %p61_p7 = scmp.eq.s32.totalorder %s1189_s10, 1  ;;  %p67_p8 = scmp.eq.s32.totalorder %s992_s11, 1 }
   0xd   : > { %s1848_s17 = scalar_select %p1211_p6, 1, 0 }
   0xe   : > { %p1020_p10 = scmp.lt.s32.totalorder %s1150_s9, 2  ;;  %p1218_p11 = por %p61_p7, %p31_p0 }
   0xf   : > { %p1222_p12 = por %p67_p8, %p37_p3  ;;  %s87_s20 = sand.u32 1, %s1146_s8  }
  0x10   : > { %s1849_s18 = scalar_select %p1218_p11, 1, 0 }
  0x11   : > { %s1850_s19 = scalar_select %p1222_p12, 1, 0 }
  0x12   : > { %s1006_s21 = sshll.u32 %s1150_s9, 15  ;;  %s995_s22 = sshll.u32 %s87_s20, 11 }
  0x13   : > { %s1231_s25 = scalar_lea.hbm %s1843_s0, %s1006_s21  ;;  %s91_s26 = scalar_lea.vmem [#allocation2], %s995_s22 }
  0x14   : > { %s98_s27 = sshll.u32 %s91_s26, 4  ;;  %p1235_p13 = pnand %p1020_p10, %p1207_p5  ;;  %s1239_s27 = int_to_ptr.vmem [resolvable:$true] %s98_s27 }
  0x15   : > { %s1241_s29 = scalar_lea.sflag [#allocation3], %s87_s20  ;;  %s1058_s30 = scalar_lea.hbm %s1231_s25, 32768 }
  0x16   : > { %p1059_p0 = scmp.ne.s32.totalorder %s1231_s25, %s1058_s30  ;;  %p1060_p1 = pneg %p1235_p13 }
  0x17   : > { %s1063_s4 = scalar_lea.hbm %s1843_s0, 65536  ;;  %p1064_p4 = scmp.lt.s32.totalorder %s1231_s25, %s1843_s0 }
  0x18   : > { %p1061_p2 = pnand %p1060_p1, %p1059_p0  ;;  %p1065_p5 = scmp.lt.s32.totalorder %s1063_s4, %s1058_s30 }
  0x1a   : > { %p1062_p3 = pneg %p1061_p2  ;;  %p1066_p7 = por %p1065_p5, %p1064_p4 }
  0x1c   : > { %p1067_p8 = pnand %p1066_p7, %p1062_p3 }
  0x1e   : > { %1070 = shalt.err (!%p1067_p8)
}
  0x1f   : > { %s1071_s13 = scalar_lea.vmem %s1239_s27, 32768  ;;  %s1152_s14 = smov [#allocation2]  }
  0x20   : > { %p1072_p10 = scmp.ne.s32.totalorder %s1239_s27, %s1071_s13  ;;  %s1076_s16 = sshll.u32 %s1152_s14, 4  ;;  %s1077_s16 = int_to_ptr.vmem [resolvable:$false] %s1076_s16 }
  0x21   : > { %s1078_s20 = scalar_lea.vmem %s1077_s16, 65536  ;;  %p1079_p2 = scmp.lt.s32.totalorder %s1239_s27, %s1077_s16 }
  0x22   : > { %p1074_p9 = pnand %p1072_p10, %p1060_p1  ;;  %p1080_p12 = scmp.lt.s32.totalorder %s1078_s20, %s1071_s13 }
  0x24   : > { %p1075_p0 = pneg %p1074_p9  ;;  %p1081_p11 = por %p1080_p12, %p1079_p2 }
  0x26   : > { %p1082_p6 = pnand %p1081_p11, %p1075_p0 }
  0x28   : > { %1085 = shalt.err (!%p1082_p6)
}
  0x29   : > { %s1153_s21 = smov 128   ;;  %s1154_s22 = smov 8  }
  0x2a   : > { %1015 = dma.hbm_to_vmem [thread:$0]  (!%p1235_p13), %s1231_s25, 32768, %s1239_s27, %s1241_s29, %s1153_s21, %s1153_s21, %s1154_s22  }
  0x2b   : > { %p998_p9 = scmp.ge.s32.totalorder %s1150_s9, 1  ;;  %p106_p1 = scmp.lt.s32.totalorder %s1150_s9, 3 }
  0x2d   : > { %p107_p3 = pnand %p998_p9, %p106_p1 }
  0x2e   : > { %s1265_s23 = sand.u32 (!%p107_p3), 1, %s1142_s7   ;;  %p1852_p6 = scmp.ne.s32.totalorder (!%p107_p3), %s1848_s17, 0 }
  0x2f   : > { %110 = sbr.rel (%p107_p3) target bundleno = 204 (0xcc), region = 24  ;;  %s999_s24 = sshll.u32 (!%p107_p3), %s1265_s23, 11 }
  0x30   : > { %s113_s26 = scalar_lea.sflag (!%p107_p3), [#allocation3], %s1265_s23  ;;  %s1269_s30 = scalar_lea.vmem (!%p107_p3), [#allocation2], %s999_s24 }
  0x34   : > { %1129 = dma.done.wait (%p1852_p6), %s113_s26, 32768  }
  0x35   : > { %1131 = vsyncadd (%p1852_p6), %s113_s26, 4294934528  ;;  %v137_v0 = vld [vmem:[%s1269_s30] sm:$0xff]  ;;  %v138_v1 = vld [vmem:[%s1269_s30 + $0x8] sm:$0xff]  ;;  %s1007_s25 = sshll.u32 %s1189_s10, 15  ;;  %s1279_s27 = scalar_lea.vmem [#allocation5], %s999_s24 }
  0x36   : > { %v139_v2 = vld [vmem:[%s1269_s30 + $0x10] sm:$0xff]  ;;  %s919_s17 = sshll.u32 %s1279_s27, 4  ;;  %v393_v3 = vmax.f32 %v137_v0, 0.0  ;;  %v394_v4 = vmax.f32 %v138_v1, 0.0  ;;  %v140_v6 = vld [vmem:[%s1269_s30 + $0x18] sm:$0xff]  ;;  %v141_v7 = vld [vmem:[%s1269_s30 + $0x20] sm:$0xff]  ;;  %s1789_s2 = scalar_lea.hbm %s1844_s1, %s1007_s25  ;;  %s1793_s17 = int_to_ptr.vmem [resolvable:$true] %s919_s17 }
  0x37   : > { %v395_v5 = vmax.f32 %v139_v2, 0.0  ;;  %v142_v8 = vld [vmem:[%s1269_s30 + $0x28] sm:$0xff]  ;;  %v396_v9 = vmax.f32 %v140_v6, 0.0  ;;  %v397_v10 = vmax.f32 %v141_v7, 0.0  ;;  %v143_v12 = vld [vmem:[%s1269_s30 + $0x30] sm:$0xff]  ;;  %v144_v13 = vld [vmem:[%s1269_s30 + $0x38] sm:$0xff] }
  0x38   : > { %v398_v11 = vmax.f32 %v142_v8, 0.0  ;;  %v145_v14 = vld [vmem:[%s1269_s30 + $0x40] sm:$0xff]  ;;  %649 = vst [vmem:[%s1279_s27] sm:$0xff] %v393_v3  ;;  %650 = vst [vmem:[%s1279_s27 + $0x8] sm:$0xff] %v394_v4  ;;  %v399_v15 = vmax.f32 %v143_v12, 0.0  ;;  %v400_v16 = vmax.f32 %v144_v13, 0.0  ;;  %v146_v18 = vld [vmem:[%s1269_s30 + $0x48] sm:$0xff] }
  0x39   : > { %651 = vst [vmem:[%s1279_s27 + $0x10] sm:$0xff] %v395_v5  ;;  %v401_v17 = vmax.f32 %v145_v14, 0.0  ;;  %v147_v19 = vld [vmem:[%s1269_s30 + $0x50] sm:$0xff]  ;;  %v148_v20 = vld [vmem:[%s1269_s30 + $0x58] sm:$0xff]  ;;  %652 = vst [vmem:[%s1279_s27 + $0x18] sm:$0xff] %v396_v9  ;;  %v402_v21 = vmax.f32 %v146_v18, 0.0 }
  0x3a   : > { %653 = vst [vmem:[%s1279_s27 + $0x20] sm:$0xff] %v397_v10  ;;  %654 = vst [vmem:[%s1279_s27 + $0x28] sm:$0xff] %v398_v11  ;;  %v403_v22 = vmax.f32 %v147_v19, 0.0  ;;  %v404_v23 = vmax.f32 %v148_v20, 0.0  ;;  %v149_v24 = vld [vmem:[%s1269_s30 + $0x60] sm:$0xff]  ;;  %v150_v25 = vld [vmem:[%s1269_s30 + $0x68] sm:$0xff] }
  0x3b   : > { %v151_v26 = vld [vmem:[%s1269_s30 + $0x70] sm:$0xff]  ;;  %655 = vst [vmem:[%s1279_s27 + $0x30] sm:$0xff] %v399_v15  ;;  %656 = vst [vmem:[%s1279_s27 + $0x38] sm:$0xff] %v400_v16  ;;  %v405_v27 = vmax.f32 %v149_v24, 0.0  ;;  %v406_v28 = vmax.f32 %v150_v25, 0.0  ;;  %v152_v30 = vld [vmem:[%s1269_s30 + $0x78] sm:$0xff] }
  0x3c   : > { %657 = vst [vmem:[%s1279_s27 + $0x40] sm:$0xff] %v401_v17  ;;  %v407_v29 = vmax.f32 %v151_v26, 0.0  ;;  %v153_v31 = vld [vmem:[%s1269_s30 + $0x80] sm:$0xff]  ;;  %v154_v32 = vld [vmem:[%s1269_s30 + $0x88] sm:$0xff]  ;;  %658 = vst [vmem:[%s1279_s27 + $0x48] sm:$0xff] %v402_v21  ;;  %v408_v33 = vmax.f32 %v152_v30, 0.0 }
  0x3d   : > { %659 = vst [vmem:[%s1279_s27 + $0x50] sm:$0xff] %v403_v22  ;;  %660 = vst [vmem:[%s1279_s27 + $0x58] sm:$0xff] %v404_v23  ;;  %v409_v34 = vmax.f32 %v153_v31, 0.0  ;;  %v410_v35 = vmax.f32 %v154_v32, 0.0  ;;  %v155_v36 = vld [vmem:[%s1269_s30 + $0x90] sm:$0xff]  ;;  %v156_v37 = vld [vmem:[%s1269_s30 + $0x98] sm:$0xff] }
  0x3e   : > { %v157_v38 = vld [vmem:[%s1269_s30 + $0xa0] sm:$0xff]  ;;  %661 = vst [vmem:[%s1279_s27 + $0x60] sm:$0xff] %v405_v27  ;;  %662 = vst [vmem:[%s1279_s27 + $0x68] sm:$0xff] %v406_v28  ;;  %v411_v39 = vmax.f32 %v155_v36, 0.0  ;;  %v412_v40 = vmax.f32 %v156_v37, 0.0  ;;  %v158_v42 = vld [vmem:[%s1269_s30 + $0xa8] sm:$0xff] }
  0x3f   : > { %663 = vst [vmem:[%s1279_s27 + $0x70] sm:$0xff] %v407_v29  ;;  %v413_v41 = vmax.f32 %v157_v38, 0.0  ;;  %v159_v43 = vld [vmem:[%s1269_s30 + $0xb0] sm:$0xff]  ;;  %v160_v44 = vld [vmem:[%s1269_s30 + $0xb8] sm:$0xff]  ;;  %664 = vst [vmem:[%s1279_s27 + $0x78] sm:$0xff] %v408_v33  ;;  %v414_v45 = vmax.f32 %v158_v42, 0.0 }
  0x40   : > { %665 = vst [vmem:[%s1279_s27 + $0x80] sm:$0xff] %v409_v34  ;;  %666 = vst [vmem:[%s1279_s27 + $0x88] sm:$0xff] %v410_v35  ;;  %v415_v46 = vmax.f32 %v159_v43, 0.0  ;;  %v416_v47 = vmax.f32 %v160_v44, 0.0  ;;  %v161_v48 = vld [vmem:[%s1269_s30 + $0xc0] sm:$0xff]  ;;  %v162_v49 = vld [vmem:[%s1269_s30 + $0xc8] sm:$0xff] }
  0x41   : > { %v163_v50 = vld [vmem:[%s1269_s30 + $0xd0] sm:$0xff]  ;;  %667 = vst [vmem:[%s1279_s27 + $0x90] sm:$0xff] %v411_v39  ;;  %668 = vst [vmem:[%s1279_s27 + $0x98] sm:$0xff] %v412_v40  ;;  %v417_v51 = vmax.f32 %v161_v48, 0.0  ;;  %v418_v52 = vmax.f32 %v162_v49, 0.0  ;;  %v164_v54 = vld [vmem:[%s1269_s30 + $0xd8] sm:$0xff] }
  0x42   : > { %669 = vst [vmem:[%s1279_s27 + $0xa0] sm:$0xff] %v413_v41  ;;  %v419_v53 = vmax.f32 %v163_v50, 0.0  ;;  %v165_v55 = vld [vmem:[%s1269_s30 + $0xe0] sm:$0xff]  ;;  %v166_v56 = vld [vmem:[%s1269_s30 + $0xe8] sm:$0xff]  ;;  %670 = vst [vmem:[%s1279_s27 + $0xa8] sm:$0xff] %v414_v45  ;;  %v420_v57 = vmax.f32 %v164_v54, 0.0 }
  0x43   : > { %671 = vst [vmem:[%s1279_s27 + $0xb0] sm:$0xff] %v415_v46  ;;  %672 = vst [vmem:[%s1279_s27 + $0xb8] sm:$0xff] %v416_v47  ;;  %v421_v58 = vmax.f32 %v165_v55, 0.0  ;;  %v422_v59 = vmax.f32 %v166_v56, 0.0  ;;  %v167_v60 = vld [vmem:[%s1269_s30 + $0xf0] sm:$0xff]  ;;  %v168_v61 = vld [vmem:[%s1269_s30 + $0xf8] sm:$0xff] }
  0x44   : > { %v169_v62 = vld [vmem:[%s1269_s30 + $0x100] sm:$0xff]  ;;  %673 = vst [vmem:[%s1279_s27 + $0xc0] sm:$0xff] %v417_v51  ;;  %674 = vst [vmem:[%s1279_s27 + $0xc8] sm:$0xff] %v418_v52  ;;  %v423_v63 = vmax.f32 %v167_v60, 0.0  ;;  %v424_v0 = vmax.f32 %v168_v61, 0.0  ;;  %v170_v2 = vld [vmem:[%s1269_s30 + $0x108] sm:$0xff] }
  0x45   : > { %675 = vst [vmem:[%s1279_s27 + $0xd0] sm:$0xff] %v419_v53  ;;  %v425_v1 = vmax.f32 %v169_v62, 0.0  ;;  %v171_v3 = vld [vmem:[%s1269_s30 + $0x110] sm:$0xff]  ;;  %v172_v4 = vld [vmem:[%s1269_s30 + $0x118] sm:$0xff]  ;;  %676 = vst [vmem:[%s1279_s27 + $0xd8] sm:$0xff] %v420_v57  ;;  %v426_v5 = vmax.f32 %v170_v2, 0.0 }
  0x46   : > { %677 = vst [vmem:[%s1279_s27 + $0xe0] sm:$0xff] %v421_v58  ;;  %678 = vst [vmem:[%s1279_s27 + $0xe8] sm:$0xff] %v422_v59  ;;  %v427_v6 = vmax.f32 %v171_v3, 0.0  ;;  %v428_v7 = vmax.f32 %v172_v4, 0.0  ;;  %v173_v8 = vld [vmem:[%s1269_s30 + $0x120] sm:$0xff]  ;;  %v174_v9 = vld [vmem:[%s1269_s30 + $0x128] sm:$0xff] }
  0x47   : > { %v175_v10 = vld [vmem:[%s1269_s30 + $0x130] sm:$0xff]  ;;  %679 = vst [vmem:[%s1279_s27 + $0xf0] sm:$0xff] %v423_v63  ;;  %680 = vst [vmem:[%s1279_s27 + $0xf8] sm:$0xff] %v424_v0  ;;  %v429_v11 = vmax.f32 %v173_v8, 0.0  ;;  %v430_v12 = vmax.f32 %v174_v9, 0.0  ;;  %v176_v14 = vld [vmem:[%s1269_s30 + $0x138] sm:$0xff] }
  0x48   : > { %681 = vst [vmem:[%s1279_s27 + $0x100] sm:$0xff] %v425_v1  ;;  %v431_v13 = vmax.f32 %v175_v10, 0.0  ;;  %v177_v15 = vld [vmem:[%s1269_s30 + $0x140] sm:$0xff]  ;;  %v178_v16 = vld [vmem:[%s1269_s30 + $0x148] sm:$0xff]  ;;  %682 = vst [vmem:[%s1279_s27 + $0x108] sm:$0xff] %v426_v5  ;;  %v432_v17 = vmax.f32 %v176_v14, 0.0 }
  0x49   : > { %683 = vst [vmem:[%s1279_s27 + $0x110] sm:$0xff] %v427_v6  ;;  %684 = vst [vmem:[%s1279_s27 + $0x118] sm:$0xff] %v428_v7  ;;  %v433_v18 = vmax.f32 %v177_v15, 0.0  ;;  %v434_v19 = vmax.f32 %v178_v16, 0.0  ;;  %v179_v20 = vld [vmem:[%s1269_s30 + $0x150] sm:$0xff]  ;;  %v180_v21 = vld [vmem:[%s1269_s30 + $0x158] sm:$0xff] }
  0x4a   : > { %v181_v22 = vld [vmem:[%s1269_s30 + $0x160] sm:$0xff]  ;;  %685 = vst [vmem:[%s1279_s27 + $0x120] sm:$0xff] %v429_v11  ;;  %686 = vst [vmem:[%s1279_s27 + $0x128] sm:$0xff] %v430_v12  ;;  %v435_v23 = vmax.f32 %v179_v20, 0.0  ;;  %v436_v24 = vmax.f32 %v180_v21, 0.0  ;;  %v182_v26 = vld [vmem:[%s1269_s30 + $0x168] sm:$0xff] }
  0x4b   : > { %687 = vst [vmem:[%s1279_s27 + $0x130] sm:$0xff] %v431_v13  ;;  %v437_v25 = vmax.f32 %v181_v22, 0.0  ;;  %v183_v27 = vld [vmem:[%s1269_s30 + $0x170] sm:$0xff]  ;;  %v184_v28 = vld [vmem:[%s1269_s30 + $0x178] sm:$0xff]  ;;  %688 = vst [vmem:[%s1279_s27 + $0x138] sm:$0xff] %v432_v17  ;;  %v438_v29 = vmax.f32 %v182_v26, 0.0 }
  0x4c   : > { %689 = vst [vmem:[%s1279_s27 + $0x140] sm:$0xff] %v433_v18  ;;  %690 = vst [vmem:[%s1279_s27 + $0x148] sm:$0xff] %v434_v19  ;;  %v439_v30 = vmax.f32 %v183_v27, 0.0  ;;  %v440_v31 = vmax.f32 %v184_v28, 0.0  ;;  %v185_v32 = vld [vmem:[%s1269_s30 + $0x180] sm:$0xff]  ;;  %v186_v33 = vld [vmem:[%s1269_s30 + $0x188] sm:$0xff] }
  0x4d   : > { %v187_v34 = vld [vmem:[%s1269_s30 + $0x190] sm:$0xff]  ;;  %691 = vst [vmem:[%s1279_s27 + $0x150] sm:$0xff] %v435_v23  ;;  %692 = vst [vmem:[%s1279_s27 + $0x158] sm:$0xff] %v436_v24  ;;  %v441_v35 = vmax.f32 %v185_v32, 0.0  ;;  %v442_v36 = vmax.f32 %v186_v33, 0.0  ;;  %v188_v38 = vld [vmem:[%s1269_s30 + $0x198] sm:$0xff] }
  0x4e   : > { %693 = vst [vmem:[%s1279_s27 + $0x160] sm:$0xff] %v437_v25  ;;  %v443_v37 = vmax.f32 %v187_v34, 0.0  ;;  %v189_v39 = vld [vmem:[%s1269_s30 + $0x1a0] sm:$0xff]  ;;  %v190_v40 = vld [vmem:[%s1269_s30 + $0x1a8] sm:$0xff]  ;;  %694 = vst [vmem:[%s1279_s27 + $0x168] sm:$0xff] %v438_v29  ;;  %v444_v41 = vmax.f32 %v188_v38, 0.0 }
  0x4f   : > { %695 = vst [vmem:[%s1279_s27 + $0x170] sm:$0xff] %v439_v30  ;;  %696 = vst [vmem:[%s1279_s27 + $0x178] sm:$0xff] %v440_v31  ;;  %v445_v42 = vmax.f32 %v189_v39, 0.0  ;;  %v446_v43 = vmax.f32 %v190_v40, 0.0  ;;  %v191_v44 = vld [vmem:[%s1269_s30 + $0x1b0] sm:$0xff]  ;;  %v192_v45 = vld [vmem:[%s1269_s30 + $0x1b8] sm:$0xff] }
  0x50   : > { %v193_v46 = vld [vmem:[%s1269_s30 + $0x1c0] sm:$0xff]  ;;  %697 = vst [vmem:[%s1279_s27 + $0x180] sm:$0xff] %v441_v35  ;;  %698 = vst [vmem:[%s1279_s27 + $0x188] sm:$0xff] %v442_v36  ;;  %v447_v47 = vmax.f32 %v191_v44, 0.0  ;;  %v448_v48 = vmax.f32 %v192_v45, 0.0  ;;  %v194_v50 = vld [vmem:[%s1269_s30 + $0x1c8] sm:$0xff] }
  0x51   : > { %699 = vst [vmem:[%s1279_s27 + $0x190] sm:$0xff] %v443_v37  ;;  %v449_v49 = vmax.f32 %v193_v46, 0.0  ;;  %v195_v51 = vld [vmem:[%s1269_s30 + $0x1d0] sm:$0xff]  ;;  %v196_v52 = vld [vmem:[%s1269_s30 + $0x1d8] sm:$0xff]  ;;  %700 = vst [vmem:[%s1279_s27 + $0x198] sm:$0xff] %v444_v41  ;;  %v450_v53 = vmax.f32 %v194_v50, 0.0 }
  0x52   : > { %701 = vst [vmem:[%s1279_s27 + $0x1a0] sm:$0xff] %v445_v42  ;;  %702 = vst [vmem:[%s1279_s27 + $0x1a8] sm:$0xff] %v446_v43  ;;  %v451_v54 = vmax.f32 %v195_v51, 0.0  ;;  %v452_v55 = vmax.f32 %v196_v52, 0.0  ;;  %v197_v56 = vld [vmem:[%s1269_s30 + $0x1e0] sm:$0xff]  ;;  %v198_v57 = vld [vmem:[%s1269_s30 + $0x1e8] sm:$0xff] }
  0x53   : > { %v199_v58 = vld [vmem:[%s1269_s30 + $0x1f0] sm:$0xff]  ;;  %703 = vst [vmem:[%s1279_s27 + $0x1b0] sm:$0xff] %v447_v47  ;;  %704 = vst [vmem:[%s1279_s27 + $0x1b8] sm:$0xff] %v448_v48  ;;  %v453_v59 = vmax.f32 %v197_v56, 0.0  ;;  %v454_v60 = vmax.f32 %v198_v57, 0.0  ;;  %v200_v62 = vld [vmem:[%s1269_s30 + $0x1f8] sm:$0xff] }
  0x54   : > { %705 = vst [vmem:[%s1279_s27 + $0x1c0] sm:$0xff] %v449_v49  ;;  %v455_v61 = vmax.f32 %v199_v58, 0.0  ;;  %v201_v63 = vld [vmem:[%s1269_s30 + $0x200] sm:$0xff]  ;;  %v202_v0 = vld [vmem:[%s1269_s30 + $0x208] sm:$0xff]  ;;  %706 = vst [vmem:[%s1279_s27 + $0x1c8] sm:$0xff] %v450_v53  ;;  %v456_v1 = vmax.f32 %v200_v62, 0.0 }
  0x55   : > { %707 = vst [vmem:[%s1279_s27 + $0x1d0] sm:$0xff] %v451_v54  ;;  %708 = vst [vmem:[%s1279_s27 + $0x1d8] sm:$0xff] %v452_v55  ;;  %v457_v2 = vmax.f32 %v201_v63, 0.0  ;;  %v458_v3 = vmax.f32 %v202_v0, 0.0  ;;  %v203_v4 = vld [vmem:[%s1269_s30 + $0x210] sm:$0xff]  ;;  %v204_v5 = vld [vmem:[%s1269_s30 + $0x218] sm:$0xff] }
  0x56   : > { %v205_v6 = vld [vmem:[%s1269_s30 + $0x220] sm:$0xff]  ;;  %709 = vst [vmem:[%s1279_s27 + $0x1e0] sm:$0xff] %v453_v59  ;;  %710 = vst [vmem:[%s1279_s27 + $0x1e8] sm:$0xff] %v454_v60  ;;  %v459_v7 = vmax.f32 %v203_v4, 0.0  ;;  %v460_v8 = vmax.f32 %v204_v5, 0.0  ;;  %v206_v10 = vld [vmem:[%s1269_s30 + $0x228] sm:$0xff] }
  0x57   : > { %711 = vst [vmem:[%s1279_s27 + $0x1f0] sm:$0xff] %v455_v61  ;;  %v461_v9 = vmax.f32 %v205_v6, 0.0  ;;  %v207_v11 = vld [vmem:[%s1269_s30 + $0x230] sm:$0xff]  ;;  %v208_v12 = vld [vmem:[%s1269_s30 + $0x238] sm:$0xff]  ;;  %712 = vst [vmem:[%s1279_s27 + $0x1f8] sm:$0xff] %v456_v1  ;;  %v462_v13 = vmax.f32 %v206_v10, 0.0 }
  0x58   : > { %713 = vst [vmem:[%s1279_s27 + $0x200] sm:$0xff] %v457_v2  ;;  %714 = vst [vmem:[%s1279_s27 + $0x208] sm:$0xff] %v458_v3  ;;  %v463_v14 = vmax.f32 %v207_v11, 0.0  ;;  %v464_v15 = vmax.f32 %v208_v12, 0.0  ;;  %v209_v16 = vld [vmem:[%s1269_s30 + $0x240] sm:$0xff]  ;;  %v210_v17 = vld [vmem:[%s1269_s30 + $0x248] sm:$0xff] }
  0x59   : > { %v211_v18 = vld [vmem:[%s1269_s30 + $0x250] sm:$0xff]  ;;  %715 = vst [vmem:[%s1279_s27 + $0x210] sm:$0xff] %v459_v7  ;;  %716 = vst [vmem:[%s1279_s27 + $0x218] sm:$0xff] %v460_v8  ;;  %v465_v19 = vmax.f32 %v209_v16, 0.0  ;;  %v466_v20 = vmax.f32 %v210_v17, 0.0  ;;  %v212_v22 = vld [vmem:[%s1269_s30 + $0x258] sm:$0xff] }
  0x5a   : > { %717 = vst [vmem:[%s1279_s27 + $0x220] sm:$0xff] %v461_v9  ;;  %v467_v21 = vmax.f32 %v211_v18, 0.0  ;;  %v213_v23 = vld [vmem:[%s1269_s30 + $0x260] sm:$0xff]  ;;  %v214_v24 = vld [vmem:[%s1269_s30 + $0x268] sm:$0xff]  ;;  %718 = vst [vmem:[%s1279_s27 + $0x228] sm:$0xff] %v462_v13  ;;  %v468_v25 = vmax.f32 %v212_v22, 0.0 }
  0x5b   : > { %719 = vst [vmem:[%s1279_s27 + $0x230] sm:$0xff] %v463_v14  ;;  %720 = vst [vmem:[%s1279_s27 + $0x238] sm:$0xff] %v464_v15  ;;  %v469_v26 = vmax.f32 %v213_v23, 0.0  ;;  %v470_v27 = vmax.f32 %v214_v24, 0.0  ;;  %v215_v28 = vld [vmem:[%s1269_s30 + $0x270] sm:$0xff]  ;;  %v216_v29 = vld [vmem:[%s1269_s30 + $0x278] sm:$0xff] }
  0x5c   : > { %v217_v30 = vld [vmem:[%s1269_s30 + $0x280] sm:$0xff]  ;;  %721 = vst [vmem:[%s1279_s27 + $0x240] sm:$0xff] %v465_v19  ;;  %722 = vst [vmem:[%s1279_s27 + $0x248] sm:$0xff] %v466_v20  ;;  %v471_v31 = vmax.f32 %v215_v28, 0.0  ;;  %v472_v32 = vmax.f32 %v216_v29, 0.0  ;;  %v218_v34 = vld [vmem:[%s1269_s30 + $0x288] sm:$0xff] }
  0x5d   : > { %723 = vst [vmem:[%s1279_s27 + $0x250] sm:$0xff] %v467_v21  ;;  %v473_v33 = vmax.f32 %v217_v30, 0.0  ;;  %v219_v35 = vld [vmem:[%s1269_s30 + $0x290] sm:$0xff]  ;;  %v220_v36 = vld [vmem:[%s1269_s30 + $0x298] sm:$0xff]  ;;  %724 = vst [vmem:[%s1279_s27 + $0x258] sm:$0xff] %v468_v25  ;;  %v474_v37 = vmax.f32 %v218_v34, 0.0 }
  0x5e   : > { %725 = vst [vmem:[%s1279_s27 + $0x260] sm:$0xff] %v469_v26  ;;  %726 = vst [vmem:[%s1279_s27 + $0x268] sm:$0xff] %v470_v27  ;;  %v475_v38 = vmax.f32 %v219_v35, 0.0  ;;  %v476_v39 = vmax.f32 %v220_v36, 0.0  ;;  %v221_v40 = vld [vmem:[%s1269_s30 + $0x2a0] sm:$0xff]  ;;  %v222_v41 = vld [vmem:[%s1269_s30 + $0x2a8] sm:$0xff] }
  0x5f   : > { %v223_v42 = vld [vmem:[%s1269_s30 + $0x2b0] sm:$0xff]  ;;  %727 = vst [vmem:[%s1279_s27 + $0x270] sm:$0xff] %v471_v31  ;;  %728 = vst [vmem:[%s1279_s27 + $0x278] sm:$0xff] %v472_v32  ;;  %v477_v43 = vmax.f32 %v221_v40, 0.0  ;;  %v478_v44 = vmax.f32 %v222_v41, 0.0  ;;  %v224_v46 = vld [vmem:[%s1269_s30 + $0x2b8] sm:$0xff] }
  0x60   : > { %729 = vst [vmem:[%s1279_s27 + $0x280] sm:$0xff] %v473_v33  ;;  %v479_v45 = vmax.f32 %v223_v42, 0.0  ;;  %v225_v47 = vld [vmem:[%s1269_s30 + $0x2c0] sm:$0xff]  ;;  %v226_v48 = vld [vmem:[%s1269_s30 + $0x2c8] sm:$0xff]  ;;  %730 = vst [vmem:[%s1279_s27 + $0x288] sm:$0xff] %v474_v37  ;;  %v480_v49 = vmax.f32 %v224_v46, 0.0 }
  0x61   : > { %731 = vst [vmem:[%s1279_s27 + $0x290] sm:$0xff] %v475_v38  ;;  %732 = vst [vmem:[%s1279_s27 + $0x298] sm:$0xff] %v476_v39  ;;  %v481_v50 = vmax.f32 %v225_v47, 0.0  ;;  %v482_v51 = vmax.f32 %v226_v48, 0.0  ;;  %v227_v52 = vld [vmem:[%s1269_s30 + $0x2d0] sm:$0xff]  ;;  %v228_v53 = vld [vmem:[%s1269_s30 + $0x2d8] sm:$0xff] }
  0x62   : > { %v229_v54 = vld [vmem:[%s1269_s30 + $0x2e0] sm:$0xff]  ;;  %733 = vst [vmem:[%s1279_s27 + $0x2a0] sm:$0xff] %v477_v43  ;;  %734 = vst [vmem:[%s1279_s27 + $0x2a8] sm:$0xff] %v478_v44  ;;  %v483_v55 = vmax.f32 %v227_v52, 0.0  ;;  %v484_v56 = vmax.f32 %v228_v53, 0.0  ;;  %v230_v58 = vld [vmem:[%s1269_s30 + $0x2e8] sm:$0xff] }
  0x63   : > { %735 = vst [vmem:[%s1279_s27 + $0x2b0] sm:$0xff] %v479_v45  ;;  %v485_v57 = vmax.f32 %v229_v54, 0.0  ;;  %v231_v59 = vld [vmem:[%s1269_s30 + $0x2f0] sm:$0xff]  ;;  %v232_v60 = vld [vmem:[%s1269_s30 + $0x2f8] sm:$0xff]  ;;  %736 = vst [vmem:[%s1279_s27 + $0x2b8] sm:$0xff] %v480_v49  ;;  %v486_v61 = vmax.f32 %v230_v58, 0.0 }
  0x64   : > { %737 = vst [vmem:[%s1279_s27 + $0x2c0] sm:$0xff] %v481_v50  ;;  %738 = vst [vmem:[%s1279_s27 + $0x2c8] sm:$0xff] %v482_v51  ;;  %v487_v62 = vmax.f32 %v231_v59, 0.0  ;;  %v488_v63 = vmax.f32 %v232_v60, 0.0  ;;  %v233_v0 = vld [vmem:[%s1269_s30 + $0x300] sm:$0xff]  ;;  %v234_v1 = vld [vmem:[%s1269_s30 + $0x308] sm:$0xff] }
  0x65   : > { %v235_v2 = vld [vmem:[%s1269_s30 + $0x310] sm:$0xff]  ;;  %739 = vst [vmem:[%s1279_s27 + $0x2d0] sm:$0xff] %v483_v55  ;;  %740 = vst [vmem:[%s1279_s27 + $0x2d8] sm:$0xff] %v484_v56  ;;  %v489_v3 = vmax.f32 %v233_v0, 0.0  ;;  %v490_v4 = vmax.f32 %v234_v1, 0.0  ;;  %v236_v6 = vld [vmem:[%s1269_s30 + $0x318] sm:$0xff] }
  0x66   : > { %741 = vst [vmem:[%s1279_s27 + $0x2e0] sm:$0xff] %v485_v57  ;;  %v491_v5 = vmax.f32 %v235_v2, 0.0  ;;  %v237_v7 = vld [vmem:[%s1269_s30 + $0x320] sm:$0xff]  ;;  %v238_v8 = vld [vmem:[%s1269_s30 + $0x328] sm:$0xff]  ;;  %742 = vst [vmem:[%s1279_s27 + $0x2e8] sm:$0xff] %v486_v61  ;;  %v492_v9 = vmax.f32 %v236_v6, 0.0 }
  0x67   : > { %743 = vst [vmem:[%s1279_s27 + $0x2f0] sm:$0xff] %v487_v62  ;;  %744 = vst [vmem:[%s1279_s27 + $0x2f8] sm:$0xff] %v488_v63  ;;  %v493_v10 = vmax.f32 %v237_v7, 0.0  ;;  %v494_v11 = vmax.f32 %v238_v8, 0.0  ;;  %v239_v12 = vld [vmem:[%s1269_s30 + $0x330] sm:$0xff]  ;;  %v240_v13 = vld [vmem:[%s1269_s30 + $0x338] sm:$0xff] }
  0x68   : > { %v241_v14 = vld [vmem:[%s1269_s30 + $0x340] sm:$0xff]  ;;  %745 = vst [vmem:[%s1279_s27 + $0x300] sm:$0xff] %v489_v3  ;;  %746 = vst [vmem:[%s1279_s27 + $0x308] sm:$0xff] %v490_v4  ;;  %v495_v15 = vmax.f32 %v239_v12, 0.0  ;;  %v496_v16 = vmax.f32 %v240_v13, 0.0  ;;  %v242_v18 = vld [vmem:[%s1269_s30 + $0x348] sm:$0xff] }
  0x69   : > { %747 = vst [vmem:[%s1279_s27 + $0x310] sm:$0xff] %v491_v5  ;;  %v497_v17 = vmax.f32 %v241_v14, 0.0  ;;  %v243_v19 = vld [vmem:[%s1269_s30 + $0x350] sm:$0xff]  ;;  %v244_v20 = vld [vmem:[%s1269_s30 + $0x358] sm:$0xff]  ;;  %748 = vst [vmem:[%s1279_s27 + $0x318] sm:$0xff] %v492_v9  ;;  %v498_v21 = vmax.f32 %v242_v18, 0.0 }
  0x6a   : > { %749 = vst [vmem:[%s1279_s27 + $0x320] sm:$0xff] %v493_v10  ;;  %750 = vst [vmem:[%s1279_s27 + $0x328] sm:$0xff] %v494_v11  ;;  %v499_v22 = vmax.f32 %v243_v19, 0.0  ;;  %v500_v23 = vmax.f32 %v244_v20, 0.0  ;;  %v245_v24 = vld [vmem:[%s1269_s30 + $0x360] sm:$0xff]  ;;  %v246_v25 = vld [vmem:[%s1269_s30 + $0x368] sm:$0xff] }
  0x6b   : > { %v247_v26 = vld [vmem:[%s1269_s30 + $0x370] sm:$0xff]  ;;  %751 = vst [vmem:[%s1279_s27 + $0x330] sm:$0xff] %v495_v15  ;;  %752 = vst [vmem:[%s1279_s27 + $0x338] sm:$0xff] %v496_v16  ;;  %v501_v27 = vmax.f32 %v245_v24, 0.0  ;;  %v502_v28 = vmax.f32 %v246_v25, 0.0  ;;  %v248_v30 = vld [vmem:[%s1269_s30 + $0x378] sm:$0xff] }
  0x6c   : > { %753 = vst [vmem:[%s1279_s27 + $0x340] sm:$0xff] %v497_v17  ;;  %v503_v29 = vmax.f32 %v247_v26, 0.0  ;;  %v249_v31 = vld [vmem:[%s1269_s30 + $0x380] sm:$0xff]  ;;  %v250_v32 = vld [vmem:[%s1269_s30 + $0x388] sm:$0xff]  ;;  %754 = vst [vmem:[%s1279_s27 + $0x348] sm:$0xff] %v498_v21  ;;  %v504_v33 = vmax.f32 %v248_v30, 0.0 }
  0x6d   : > { %755 = vst [vmem:[%s1279_s27 + $0x350] sm:$0xff] %v499_v22  ;;  %756 = vst [vmem:[%s1279_s27 + $0x358] sm:$0xff] %v500_v23  ;;  %v505_v34 = vmax.f32 %v249_v31, 0.0  ;;  %v506_v35 = vmax.f32 %v250_v32, 0.0  ;;  %v251_v36 = vld [vmem:[%s1269_s30 + $0x390] sm:$0xff]  ;;  %v252_v37 = vld [vmem:[%s1269_s30 + $0x398] sm:$0xff] }
  0x6e   : > { %v253_v38 = vld [vmem:[%s1269_s30 + $0x3a0] sm:$0xff]  ;;  %757 = vst [vmem:[%s1279_s27 + $0x360] sm:$0xff] %v501_v27  ;;  %758 = vst [vmem:[%s1279_s27 + $0x368] sm:$0xff] %v502_v28  ;;  %v507_v39 = vmax.f32 %v251_v36, 0.0  ;;  %v508_v40 = vmax.f32 %v252_v37, 0.0  ;;  %v254_v42 = vld [vmem:[%s1269_s30 + $0x3a8] sm:$0xff] }
  0x6f   : > { %759 = vst [vmem:[%s1279_s27 + $0x370] sm:$0xff] %v503_v29  ;;  %v509_v41 = vmax.f32 %v253_v38, 0.0  ;;  %v255_v43 = vld [vmem:[%s1269_s30 + $0x3b0] sm:$0xff]  ;;  %v256_v44 = vld [vmem:[%s1269_s30 + $0x3b8] sm:$0xff]  ;;  %760 = vst [vmem:[%s1279_s27 + $0x378] sm:$0xff] %v504_v33  ;;  %v510_v45 = vmax.f32 %v254_v42, 0.0 }
  0x70   : > { %761 = vst [vmem:[%s1279_s27 + $0x380] sm:$0xff] %v505_v34  ;;  %762 = vst [vmem:[%s1279_s27 + $0x388] sm:$0xff] %v506_v35  ;;  %v511_v46 = vmax.f32 %v255_v43, 0.0  ;;  %v512_v47 = vmax.f32 %v256_v44, 0.0  ;;  %v257_v48 = vld [vmem:[%s1269_s30 + $0x3c0] sm:$0xff]  ;;  %v258_v49 = vld [vmem:[%s1269_s30 + $0x3c8] sm:$0xff] }
  0x71   : > { %v259_v50 = vld [vmem:[%s1269_s30 + $0x3d0] sm:$0xff]  ;;  %763 = vst [vmem:[%s1279_s27 + $0x390] sm:$0xff] %v507_v39  ;;  %764 = vst [vmem:[%s1279_s27 + $0x398] sm:$0xff] %v508_v40  ;;  %v513_v51 = vmax.f32 %v257_v48, 0.0  ;;  %v514_v52 = vmax.f32 %v258_v49, 0.0  ;;  %v260_v54 = vld [vmem:[%s1269_s30 + $0x3d8] sm:$0xff] }
  0x72   : > { %765 = vst [vmem:[%s1279_s27 + $0x3a0] sm:$0xff] %v509_v41  ;;  %v515_v53 = vmax.f32 %v259_v50, 0.0  ;;  %v261_v55 = vld [vmem:[%s1269_s30 + $0x3e0] sm:$0xff]  ;;  %v262_v56 = vld [vmem:[%s1269_s30 + $0x3e8] sm:$0xff]  ;;  %766 = vst [vmem:[%s1279_s27 + $0x3a8] sm:$0xff] %v510_v45  ;;  %v516_v57 = vmax.f32 %v260_v54, 0.0 }
  0x73   : > { %767 = vst [vmem:[%s1279_s27 + $0x3b0] sm:$0xff] %v511_v46  ;;  %768 = vst [vmem:[%s1279_s27 + $0x3b8] sm:$0xff] %v512_v47  ;;  %v517_v58 = vmax.f32 %v261_v55, 0.0  ;;  %v518_v59 = vmax.f32 %v262_v56, 0.0  ;;  %v263_v60 = vld [vmem:[%s1269_s30 + $0x3f0] sm:$0xff]  ;;  %v264_v61 = vld [vmem:[%s1269_s30 + $0x3f8] sm:$0xff] }
  0x74   : > { %v265_v62 = vld [vmem:[%s1269_s30 + $0x400] sm:$0xff]  ;;  %769 = vst [vmem:[%s1279_s27 + $0x3c0] sm:$0xff] %v513_v51  ;;  %770 = vst [vmem:[%s1279_s27 + $0x3c8] sm:$0xff] %v514_v52  ;;  %v519_v63 = vmax.f32 %v263_v60, 0.0  ;;  %v520_v0 = vmax.f32 %v264_v61, 0.0  ;;  %v266_v2 = vld [vmem:[%s1269_s30 + $0x408] sm:$0xff] }
  0x75   : > { %771 = vst [vmem:[%s1279_s27 + $0x3d0] sm:$0xff] %v515_v53  ;;  %v521_v1 = vmax.f32 %v265_v62, 0.0  ;;  %v267_v3 = vld [vmem:[%s1269_s30 + $0x410] sm:$0xff]  ;;  %v268_v4 = vld [vmem:[%s1269_s30 + $0x418] sm:$0xff]  ;;  %772 = vst [vmem:[%s1279_s27 + $0x3d8] sm:$0xff] %v516_v57  ;;  %v522_v5 = vmax.f32 %v266_v2, 0.0 }
  0x76   : > { %773 = vst [vmem:[%s1279_s27 + $0x3e0] sm:$0xff] %v517_v58  ;;  %774 = vst [vmem:[%s1279_s27 + $0x3e8] sm:$0xff] %v518_v59  ;;  %v523_v6 = vmax.f32 %v267_v3, 0.0  ;;  %v524_v7 = vmax.f32 %v268_v4, 0.0  ;;  %v269_v8 = vld [vmem:[%s1269_s30 + $0x420] sm:$0xff]  ;;  %v270_v9 = vld [vmem:[%s1269_s30 + $0x428] sm:$0xff] }
  0x77   : > { %v271_v10 = vld [vmem:[%s1269_s30 + $0x430] sm:$0xff]  ;;  %775 = vst [vmem:[%s1279_s27 + $0x3f0] sm:$0xff] %v519_v63  ;;  %776 = vst [vmem:[%s1279_s27 + $0x3f8] sm:$0xff] %v520_v0  ;;  %v525_v11 = vmax.f32 %v269_v8, 0.0  ;;  %v526_v12 = vmax.f32 %v270_v9, 0.0  ;;  %v272_v14 = vld [vmem:[%s1269_s30 + $0x438] sm:$0xff] }
  0x78   : > { %777 = vst [vmem:[%s1279_s27 + $0x400] sm:$0xff] %v521_v1  ;;  %v527_v13 = vmax.f32 %v271_v10, 0.0  ;;  %v273_v15 = vld [vmem:[%s1269_s30 + $0x440] sm:$0xff]  ;;  %v274_v16 = vld [vmem:[%s1269_s30 + $0x448] sm:$0xff]  ;;  %778 = vst [vmem:[%s1279_s27 + $0x408] sm:$0xff] %v522_v5  ;;  %v528_v17 = vmax.f32 %v272_v14, 0.0 }
  0x79   : > { %779 = vst [vmem:[%s1279_s27 + $0x410] sm:$0xff] %v523_v6  ;;  %780 = vst [vmem:[%s1279_s27 + $0x418] sm:$0xff] %v524_v7  ;;  %v529_v18 = vmax.f32 %v273_v15, 0.0  ;;  %v530_v19 = vmax.f32 %v274_v16, 0.0  ;;  %v275_v20 = vld [vmem:[%s1269_s30 + $0x450] sm:$0xff]  ;;  %v276_v21 = vld [vmem:[%s1269_s30 + $0x458] sm:$0xff] }
  0x7a   : > { %v277_v22 = vld [vmem:[%s1269_s30 + $0x460] sm:$0xff]  ;;  %781 = vst [vmem:[%s1279_s27 + $0x420] sm:$0xff] %v525_v11  ;;  %782 = vst [vmem:[%s1279_s27 + $0x428] sm:$0xff] %v526_v12  ;;  %v531_v23 = vmax.f32 %v275_v20, 0.0  ;;  %v532_v24 = vmax.f32 %v276_v21, 0.0  ;;  %v278_v26 = vld [vmem:[%s1269_s30 + $0x468] sm:$0xff] }
  0x7b   : > { %783 = vst [vmem:[%s1279_s27 + $0x430] sm:$0xff] %v527_v13  ;;  %v533_v25 = vmax.f32 %v277_v22, 0.0  ;;  %v279_v27 = vld [vmem:[%s1269_s30 + $0x470] sm:$0xff]  ;;  %v280_v28 = vld [vmem:[%s1269_s30 + $0x478] sm:$0xff]  ;;  %784 = vst [vmem:[%s1279_s27 + $0x438] sm:$0xff] %v528_v17  ;;  %v534_v29 = vmax.f32 %v278_v26, 0.0 }
  0x7c   : > { %785 = vst [vmem:[%s1279_s27 + $0x440] sm:$0xff] %v529_v18  ;;  %786 = vst [vmem:[%s1279_s27 + $0x448] sm:$0xff] %v530_v19  ;;  %v535_v30 = vmax.f32 %v279_v27, 0.0  ;;  %v536_v31 = vmax.f32 %v280_v28, 0.0  ;;  %v281_v32 = vld [vmem:[%s1269_s30 + $0x480] sm:$0xff]  ;;  %v282_v33 = vld [vmem:[%s1269_s30 + $0x488] sm:$0xff] }
  0x7d   : > { %v283_v34 = vld [vmem:[%s1269_s30 + $0x490] sm:$0xff]  ;;  %787 = vst [vmem:[%s1279_s27 + $0x450] sm:$0xff] %v531_v23  ;;  %788 = vst [vmem:[%s1279_s27 + $0x458] sm:$0xff] %v532_v24  ;;  %v537_v35 = vmax.f32 %v281_v32, 0.0  ;;  %v538_v36 = vmax.f32 %v282_v33, 0.0  ;;  %v284_v38 = vld [vmem:[%s1269_s30 + $0x498] sm:$0xff] }
  0x7e   : > { %789 = vst [vmem:[%s1279_s27 + $0x460] sm:$0xff] %v533_v25  ;;  %v539_v37 = vmax.f32 %v283_v34, 0.0  ;;  %v285_v39 = vld [vmem:[%s1269_s30 + $0x4a0] sm:$0xff]  ;;  %v286_v40 = vld [vmem:[%s1269_s30 + $0x4a8] sm:$0xff]  ;;  %790 = vst [vmem:[%s1279_s27 + $0x468] sm:$0xff] %v534_v29  ;;  %v540_v41 = vmax.f32 %v284_v38, 0.0 }
  0x7f   : > { %791 = vst [vmem:[%s1279_s27 + $0x470] sm:$0xff] %v535_v30  ;;  %792 = vst [vmem:[%s1279_s27 + $0x478] sm:$0xff] %v536_v31  ;;  %v541_v42 = vmax.f32 %v285_v39, 0.0  ;;  %v542_v43 = vmax.f32 %v286_v40, 0.0  ;;  %v287_v44 = vld [vmem:[%s1269_s30 + $0x4b0] sm:$0xff]  ;;  %v288_v45 = vld [vmem:[%s1269_s30 + $0x4b8] sm:$0xff] }
  0x80   : > { %v289_v46 = vld [vmem:[%s1269_s30 + $0x4c0] sm:$0xff]  ;;  %793 = vst [vmem:[%s1279_s27 + $0x480] sm:$0xff] %v537_v35  ;;  %794 = vst [vmem:[%s1279_s27 + $0x488] sm:$0xff] %v538_v36  ;;  %v543_v47 = vmax.f32 %v287_v44, 0.0  ;;  %v544_v48 = vmax.f32 %v288_v45, 0.0  ;;  %v290_v50 = vld [vmem:[%s1269_s30 + $0x4c8] sm:$0xff] }
  0x81   : > { %795 = vst [vmem:[%s1279_s27 + $0x490] sm:$0xff] %v539_v37  ;;  %v545_v49 = vmax.f32 %v289_v46, 0.0  ;;  %v291_v51 = vld [vmem:[%s1269_s30 + $0x4d0] sm:$0xff]  ;;  %v292_v52 = vld [vmem:[%s1269_s30 + $0x4d8] sm:$0xff]  ;;  %796 = vst [vmem:[%s1279_s27 + $0x498] sm:$0xff] %v540_v41  ;;  %v546_v53 = vmax.f32 %v290_v50, 0.0 }
  0x82   : > { %797 = vst [vmem:[%s1279_s27 + $0x4a0] sm:$0xff] %v541_v42  ;;  %798 = vst [vmem:[%s1279_s27 + $0x4a8] sm:$0xff] %v542_v43  ;;  %v547_v54 = vmax.f32 %v291_v51, 0.0  ;;  %v548_v55 = vmax.f32 %v292_v52, 0.0  ;;  %v293_v56 = vld [vmem:[%s1269_s30 + $0x4e0] sm:$0xff]  ;;  %v294_v57 = vld [vmem:[%s1269_s30 + $0x4e8] sm:$0xff] }
  0x83   : > { %v295_v58 = vld [vmem:[%s1269_s30 + $0x4f0] sm:$0xff]  ;;  %799 = vst [vmem:[%s1279_s27 + $0x4b0] sm:$0xff] %v543_v47  ;;  %800 = vst [vmem:[%s1279_s27 + $0x4b8] sm:$0xff] %v544_v48  ;;  %v549_v59 = vmax.f32 %v293_v56, 0.0  ;;  %v550_v60 = vmax.f32 %v294_v57, 0.0  ;;  %v296_v62 = vld [vmem:[%s1269_s30 + $0x4f8] sm:$0xff] }
  0x84   : > { %801 = vst [vmem:[%s1279_s27 + $0x4c0] sm:$0xff] %v545_v49  ;;  %v551_v61 = vmax.f32 %v295_v58, 0.0  ;;  %v297_v63 = vld [vmem:[%s1269_s30 + $0x500] sm:$0xff]  ;;  %v298_v0 = vld [vmem:[%s1269_s30 + $0x508] sm:$0xff]  ;;  %802 = vst [vmem:[%s1279_s27 + $0x4c8] sm:$0xff] %v546_v53  ;;  %v552_v1 = vmax.f32 %v296_v62, 0.0 }
  0x85   : > { %803 = vst [vmem:[%s1279_s27 + $0x4d0] sm:$0xff] %v547_v54  ;;  %804 = vst [vmem:[%s1279_s27 + $0x4d8] sm:$0xff] %v548_v55  ;;  %v553_v2 = vmax.f32 %v297_v63, 0.0  ;;  %v554_v3 = vmax.f32 %v298_v0, 0.0  ;;  %v299_v4 = vld [vmem:[%s1269_s30 + $0x510] sm:$0xff]  ;;  %v300_v5 = vld [vmem:[%s1269_s30 + $0x518] sm:$0xff] }
  0x86   : > { %v301_v6 = vld [vmem:[%s1269_s30 + $0x520] sm:$0xff]  ;;  %805 = vst [vmem:[%s1279_s27 + $0x4e0] sm:$0xff] %v549_v59  ;;  %806 = vst [vmem:[%s1279_s27 + $0x4e8] sm:$0xff] %v550_v60  ;;  %v555_v7 = vmax.f32 %v299_v4, 0.0  ;;  %v556_v8 = vmax.f32 %v300_v5, 0.0  ;;  %v302_v10 = vld [vmem:[%s1269_s30 + $0x528] sm:$0xff] }
  0x87   : > { %807 = vst [vmem:[%s1279_s27 + $0x4f0] sm:$0xff] %v551_v61  ;;  %v557_v9 = vmax.f32 %v301_v6, 0.0  ;;  %v303_v11 = vld [vmem:[%s1269_s30 + $0x530] sm:$0xff]  ;;  %v304_v12 = vld [vmem:[%s1269_s30 + $0x538] sm:$0xff]  ;;  %808 = vst [vmem:[%s1279_s27 + $0x4f8] sm:$0xff] %v552_v1  ;;  %v558_v13 = vmax.f32 %v302_v10, 0.0 }
  0x88   : > { %809 = vst [vmem:[%s1279_s27 + $0x500] sm:$0xff] %v553_v2  ;;  %810 = vst [vmem:[%s1279_s27 + $0x508] sm:$0xff] %v554_v3  ;;  %v559_v14 = vmax.f32 %v303_v11, 0.0  ;;  %v560_v15 = vmax.f32 %v304_v12, 0.0  ;;  %v305_v16 = vld [vmem:[%s1269_s30 + $0x540] sm:$0xff]  ;;  %v306_v17 = vld [vmem:[%s1269_s30 + $0x548] sm:$0xff] }
  0x89   : > { %v307_v18 = vld [vmem:[%s1269_s30 + $0x550] sm:$0xff]  ;;  %811 = vst [vmem:[%s1279_s27 + $0x510] sm:$0xff] %v555_v7  ;;  %812 = vst [vmem:[%s1279_s27 + $0x518] sm:$0xff] %v556_v8  ;;  %v561_v19 = vmax.f32 %v305_v16, 0.0  ;;  %v562_v20 = vmax.f32 %v306_v17, 0.0  ;;  %v308_v22 = vld [vmem:[%s1269_s30 + $0x558] sm:$0xff] }
  0x8a   : > { %813 = vst [vmem:[%s1279_s27 + $0x520] sm:$0xff] %v557_v9  ;;  %v563_v21 = vmax.f32 %v307_v18, 0.0  ;;  %v309_v23 = vld [vmem:[%s1269_s30 + $0x560] sm:$0xff]  ;;  %v310_v24 = vld [vmem:[%s1269_s30 + $0x568] sm:$0xff]  ;;  %814 = vst [vmem:[%s1279_s27 + $0x528] sm:$0xff] %v558_v13  ;;  %v564_v25 = vmax.f32 %v308_v22, 0.0 }
  0x8b   : > { %815 = vst [vmem:[%s1279_s27 + $0x530] sm:$0xff] %v559_v14  ;;  %816 = vst [vmem:[%s1279_s27 + $0x538] sm:$0xff] %v560_v15  ;;  %v565_v26 = vmax.f32 %v309_v23, 0.0  ;;  %v566_v27 = vmax.f32 %v310_v24, 0.0  ;;  %v311_v28 = vld [vmem:[%s1269_s30 + $0x570] sm:$0xff]  ;;  %v312_v29 = vld [vmem:[%s1269_s30 + $0x578] sm:$0xff] }
  0x8c   : > { %v313_v30 = vld [vmem:[%s1269_s30 + $0x580] sm:$0xff]  ;;  %817 = vst [vmem:[%s1279_s27 + $0x540] sm:$0xff] %v561_v19  ;;  %818 = vst [vmem:[%s1279_s27 + $0x548] sm:$0xff] %v562_v20  ;;  %v567_v31 = vmax.f32 %v311_v28, 0.0  ;;  %v568_v32 = vmax.f32 %v312_v29, 0.0  ;;  %v314_v34 = vld [vmem:[%s1269_s30 + $0x588] sm:$0xff] }
  0x8d   : > { %819 = vst [vmem:[%s1279_s27 + $0x550] sm:$0xff] %v563_v21  ;;  %v569_v33 = vmax.f32 %v313_v30, 0.0  ;;  %v315_v35 = vld [vmem:[%s1269_s30 + $0x590] sm:$0xff]  ;;  %v316_v36 = vld [vmem:[%s1269_s30 + $0x598] sm:$0xff]  ;;  %820 = vst [vmem:[%s1279_s27 + $0x558] sm:$0xff] %v564_v25  ;;  %v570_v37 = vmax.f32 %v314_v34, 0.0 }
  0x8e   : > { %821 = vst [vmem:[%s1279_s27 + $0x560] sm:$0xff] %v565_v26  ;;  %822 = vst [vmem:[%s1279_s27 + $0x568] sm:$0xff] %v566_v27  ;;  %v571_v38 = vmax.f32 %v315_v35, 0.0  ;;  %v572_v39 = vmax.f32 %v316_v36, 0.0  ;;  %v317_v40 = vld [vmem:[%s1269_s30 + $0x5a0] sm:$0xff]  ;;  %v318_v41 = vld [vmem:[%s1269_s30 + $0x5a8] sm:$0xff] }
  0x8f   : > { %v319_v42 = vld [vmem:[%s1269_s30 + $0x5b0] sm:$0xff]  ;;  %823 = vst [vmem:[%s1279_s27 + $0x570] sm:$0xff] %v567_v31  ;;  %824 = vst [vmem:[%s1279_s27 + $0x578] sm:$0xff] %v568_v32  ;;  %v573_v43 = vmax.f32 %v317_v40, 0.0  ;;  %v574_v44 = vmax.f32 %v318_v41, 0.0  ;;  %v320_v46 = vld [vmem:[%s1269_s30 + $0x5b8] sm:$0xff] }
  0x90   : > { %825 = vst [vmem:[%s1279_s27 + $0x580] sm:$0xff] %v569_v33  ;;  %v575_v45 = vmax.f32 %v319_v42, 0.0  ;;  %v321_v47 = vld [vmem:[%s1269_s30 + $0x5c0] sm:$0xff]  ;;  %v322_v48 = vld [vmem:[%s1269_s30 + $0x5c8] sm:$0xff]  ;;  %826 = vst [vmem:[%s1279_s27 + $0x588] sm:$0xff] %v570_v37  ;;  %v576_v49 = vmax.f32 %v320_v46, 0.0 }
  0x91   : > { %827 = vst [vmem:[%s1279_s27 + $0x590] sm:$0xff] %v571_v38  ;;  %828 = vst [vmem:[%s1279_s27 + $0x598] sm:$0xff] %v572_v39  ;;  %v577_v50 = vmax.f32 %v321_v47, 0.0  ;;  %v578_v51 = vmax.f32 %v322_v48, 0.0  ;;  %v323_v52 = vld [vmem:[%s1269_s30 + $0x5d0] sm:$0xff]  ;;  %v324_v53 = vld [vmem:[%s1269_s30 + $0x5d8] sm:$0xff] }
  0x92   : > { %v325_v54 = vld [vmem:[%s1269_s30 + $0x5e0] sm:$0xff]  ;;  %829 = vst [vmem:[%s1279_s27 + $0x5a0] sm:$0xff] %v573_v43  ;;  %830 = vst [vmem:[%s1279_s27 + $0x5a8] sm:$0xff] %v574_v44  ;;  %v579_v55 = vmax.f32 %v323_v52, 0.0  ;;  %v580_v56 = vmax.f32 %v324_v53, 0.0  ;;  %v326_v58 = vld [vmem:[%s1269_s30 + $0x5e8] sm:$0xff] }
  0x93   : > { %831 = vst [vmem:[%s1279_s27 + $0x5b0] sm:$0xff] %v575_v45  ;;  %v581_v57 = vmax.f32 %v325_v54, 0.0  ;;  %v327_v59 = vld [vmem:[%s1269_s30 + $0x5f0] sm:$0xff]  ;;  %v328_v60 = vld [vmem:[%s1269_s30 + $0x5f8] sm:$0xff]  ;;  %832 = vst [vmem:[%s1279_s27 + $0x5b8] sm:$0xff] %v576_v49  ;;  %v582_v61 = vmax.f32 %v326_v58, 0.0 }
  0x94   : > { %833 = vst [vmem:[%s1279_s27 + $0x5c0] sm:$0xff] %v577_v50  ;;  %834 = vst [vmem:[%s1279_s27 + $0x5c8] sm:$0xff] %v578_v51  ;;  %v583_v62 = vmax.f32 %v327_v59, 0.0  ;;  %v584_v63 = vmax.f32 %v328_v60, 0.0  ;;  %v329_v0 = vld [vmem:[%s1269_s30 + $0x600] sm:$0xff]  ;;  %v330_v1 = vld [vmem:[%s1269_s30 + $0x608] sm:$0xff] }
  0x95   : > { %v331_v2 = vld [vmem:[%s1269_s30 + $0x610] sm:$0xff]  ;;  %835 = vst [vmem:[%s1279_s27 + $0x5d0] sm:$0xff] %v579_v55  ;;  %836 = vst [vmem:[%s1279_s27 + $0x5d8] sm:$0xff] %v580_v56  ;;  %v585_v3 = vmax.f32 %v329_v0, 0.0  ;;  %v586_v4 = vmax.f32 %v330_v1, 0.0  ;;  %v332_v6 = vld [vmem:[%s1269_s30 + $0x618] sm:$0xff] }
  0x96   : > { %837 = vst [vmem:[%s1279_s27 + $0x5e0] sm:$0xff] %v581_v57  ;;  %v587_v5 = vmax.f32 %v331_v2, 0.0  ;;  %v333_v7 = vld [vmem:[%s1269_s30 + $0x620] sm:$0xff]  ;;  %v334_v8 = vld [vmem:[%s1269_s30 + $0x628] sm:$0xff]  ;;  %838 = vst [vmem:[%s1279_s27 + $0x5e8] sm:$0xff] %v582_v61  ;;  %v588_v9 = vmax.f32 %v332_v6, 0.0 }
  0x97   : > { %839 = vst [vmem:[%s1279_s27 + $0x5f0] sm:$0xff] %v583_v62  ;;  %840 = vst [vmem:[%s1279_s27 + $0x5f8] sm:$0xff] %v584_v63  ;;  %v589_v10 = vmax.f32 %v333_v7, 0.0  ;;  %v590_v11 = vmax.f32 %v334_v8, 0.0  ;;  %v335_v12 = vld [vmem:[%s1269_s30 + $0x630] sm:$0xff]  ;;  %v336_v13 = vld [vmem:[%s1269_s30 + $0x638] sm:$0xff] }
  0x98   : > { %v337_v14 = vld [vmem:[%s1269_s30 + $0x640] sm:$0xff]  ;;  %841 = vst [vmem:[%s1279_s27 + $0x600] sm:$0xff] %v585_v3  ;;  %842 = vst [vmem:[%s1279_s27 + $0x608] sm:$0xff] %v586_v4  ;;  %v591_v15 = vmax.f32 %v335_v12, 0.0  ;;  %v592_v16 = vmax.f32 %v336_v13, 0.0  ;;  %v338_v18 = vld [vmem:[%s1269_s30 + $0x648] sm:$0xff] }
  0x99   : > { %843 = vst [vmem:[%s1279_s27 + $0x610] sm:$0xff] %v587_v5  ;;  %v593_v17 = vmax.f32 %v337_v14, 0.0  ;;  %v339_v19 = vld [vmem:[%s1269_s30 + $0x650] sm:$0xff]  ;;  %v340_v20 = vld [vmem:[%s1269_s30 + $0x658] sm:$0xff]  ;;  %844 = vst [vmem:[%s1279_s27 + $0x618] sm:$0xff] %v588_v9  ;;  %v594_v21 = vmax.f32 %v338_v18, 0.0 }
  0x9a   : > { %845 = vst [vmem:[%s1279_s27 + $0x620] sm:$0xff] %v589_v10  ;;  %846 = vst [vmem:[%s1279_s27 + $0x628] sm:$0xff] %v590_v11  ;;  %v595_v22 = vmax.f32 %v339_v19, 0.0  ;;  %v596_v23 = vmax.f32 %v340_v20, 0.0  ;;  %v341_v24 = vld [vmem:[%s1269_s30 + $0x660] sm:$0xff]  ;;  %v342_v25 = vld [vmem:[%s1269_s30 + $0x668] sm:$0xff] }
  0x9b   : > { %v343_v26 = vld [vmem:[%s1269_s30 + $0x670] sm:$0xff]  ;;  %847 = vst [vmem:[%s1279_s27 + $0x630] sm:$0xff] %v591_v15  ;;  %848 = vst [vmem:[%s1279_s27 + $0x638] sm:$0xff] %v592_v16  ;;  %v597_v27 = vmax.f32 %v341_v24, 0.0  ;;  %v598_v28 = vmax.f32 %v342_v25, 0.0  ;;  %v344_v30 = vld [vmem:[%s1269_s30 + $0x678] sm:$0xff] }
  0x9c   : > { %849 = vst [vmem:[%s1279_s27 + $0x640] sm:$0xff] %v593_v17  ;;  %v599_v29 = vmax.f32 %v343_v26, 0.0  ;;  %v345_v31 = vld [vmem:[%s1269_s30 + $0x680] sm:$0xff]  ;;  %v346_v32 = vld [vmem:[%s1269_s30 + $0x688] sm:$0xff]  ;;  %850 = vst [vmem:[%s1279_s27 + $0x648] sm:$0xff] %v594_v21  ;;  %v600_v33 = vmax.f32 %v344_v30, 0.0 }
  0x9d   : > { %851 = vst [vmem:[%s1279_s27 + $0x650] sm:$0xff] %v595_v22  ;;  %852 = vst [vmem:[%s1279_s27 + $0x658] sm:$0xff] %v596_v23  ;;  %v601_v34 = vmax.f32 %v345_v31, 0.0  ;;  %v602_v35 = vmax.f32 %v346_v32, 0.0  ;;  %v347_v36 = vld [vmem:[%s1269_s30 + $0x690] sm:$0xff]  ;;  %v348_v37 = vld [vmem:[%s1269_s30 + $0x698] sm:$0xff] }
  0x9e   : > { %v349_v38 = vld [vmem:[%s1269_s30 + $0x6a0] sm:$0xff]  ;;  %853 = vst [vmem:[%s1279_s27 + $0x660] sm:$0xff] %v597_v27  ;;  %854 = vst [vmem:[%s1279_s27 + $0x668] sm:$0xff] %v598_v28  ;;  %v603_v39 = vmax.f32 %v347_v36, 0.0  ;;  %v604_v40 = vmax.f32 %v348_v37, 0.0  ;;  %v350_v42 = vld [vmem:[%s1269_s30 + $0x6a8] sm:$0xff] }
  0x9f   : > { %855 = vst [vmem:[%s1279_s27 + $0x670] sm:$0xff] %v599_v29  ;;  %v605_v41 = vmax.f32 %v349_v38, 0.0  ;;  %v351_v43 = vld [vmem:[%s1269_s30 + $0x6b0] sm:$0xff]  ;;  %v352_v44 = vld [vmem:[%s1269_s30 + $0x6b8] sm:$0xff]  ;;  %856 = vst [vmem:[%s1279_s27 + $0x678] sm:$0xff] %v600_v33  ;;  %v606_v45 = vmax.f32 %v350_v42, 0.0 }
  0xa0   : > { %857 = vst [vmem:[%s1279_s27 + $0x680] sm:$0xff] %v601_v34  ;;  %858 = vst [vmem:[%s1279_s27 + $0x688] sm:$0xff] %v602_v35  ;;  %v607_v46 = vmax.f32 %v351_v43, 0.0  ;;  %v608_v47 = vmax.f32 %v352_v44, 0.0  ;;  %v353_v48 = vld [vmem:[%s1269_s30 + $0x6c0] sm:$0xff]  ;;  %v354_v49 = vld [vmem:[%s1269_s30 + $0x6c8] sm:$0xff] }
  0xa1   : > { %v355_v50 = vld [vmem:[%s1269_s30 + $0x6d0] sm:$0xff]  ;;  %859 = vst [vmem:[%s1279_s27 + $0x690] sm:$0xff] %v603_v39  ;;  %860 = vst [vmem:[%s1279_s27 + $0x698] sm:$0xff] %v604_v40  ;;  %v609_v51 = vmax.f32 %v353_v48, 0.0  ;;  %v610_v52 = vmax.f32 %v354_v49, 0.0  ;;  %v356_v54 = vld [vmem:[%s1269_s30 + $0x6d8] sm:$0xff] }
  0xa2   : > { %861 = vst [vmem:[%s1279_s27 + $0x6a0] sm:$0xff] %v605_v41  ;;  %v611_v53 = vmax.f32 %v355_v50, 0.0  ;;  %v357_v55 = vld [vmem:[%s1269_s30 + $0x6e0] sm:$0xff]  ;;  %v358_v56 = vld [vmem:[%s1269_s30 + $0x6e8] sm:$0xff]  ;;  %862 = vst [vmem:[%s1279_s27 + $0x6a8] sm:$0xff] %v606_v45  ;;  %v612_v57 = vmax.f32 %v356_v54, 0.0 }
  0xa3   : > { %863 = vst [vmem:[%s1279_s27 + $0x6b0] sm:$0xff] %v607_v46  ;;  %864 = vst [vmem:[%s1279_s27 + $0x6b8] sm:$0xff] %v608_v47  ;;  %v613_v58 = vmax.f32 %v357_v55, 0.0  ;;  %v614_v59 = vmax.f32 %v358_v56, 0.0  ;;  %v359_v60 = vld [vmem:[%s1269_s30 + $0x6f0] sm:$0xff]  ;;  %v360_v61 = vld [vmem:[%s1269_s30 + $0x6f8] sm:$0xff] }
  0xa4   : > { %v361_v62 = vld [vmem:[%s1269_s30 + $0x700] sm:$0xff]  ;;  %865 = vst [vmem:[%s1279_s27 + $0x6c0] sm:$0xff] %v609_v51  ;;  %866 = vst [vmem:[%s1279_s27 + $0x6c8] sm:$0xff] %v610_v52  ;;  %v615_v63 = vmax.f32 %v359_v60, 0.0  ;;  %v616_v0 = vmax.f32 %v360_v61, 0.0  ;;  %v362_v2 = vld [vmem:[%s1269_s30 + $0x708] sm:$0xff] }
  0xa5   : > { %867 = vst [vmem:[%s1279_s27 + $0x6d0] sm:$0xff] %v611_v53  ;;  %v617_v1 = vmax.f32 %v361_v62, 0.0  ;;  %v363_v3 = vld [vmem:[%s1269_s30 + $0x710] sm:$0xff]  ;;  %v364_v4 = vld [vmem:[%s1269_s30 + $0x718] sm:$0xff]  ;;  %868 = vst [vmem:[%s1279_s27 + $0x6d8] sm:$0xff] %v612_v57  ;;  %v618_v5 = vmax.f32 %v362_v2, 0.0 }
  0xa6   : > { %869 = vst [vmem:[%s1279_s27 + $0x6e0] sm:$0xff] %v613_v58  ;;  %870 = vst [vmem:[%s1279_s27 + $0x6e8] sm:$0xff] %v614_v59  ;;  %v619_v6 = vmax.f32 %v363_v3, 0.0  ;;  %v620_v7 = vmax.f32 %v364_v4, 0.0  ;;  %v365_v8 = vld [vmem:[%s1269_s30 + $0x720] sm:$0xff]  ;;  %v366_v9 = vld [vmem:[%s1269_s30 + $0x728] sm:$0xff] }
  0xa7   : > { %v367_v10 = vld [vmem:[%s1269_s30 + $0x730] sm:$0xff]  ;;  %871 = vst [vmem:[%s1279_s27 + $0x6f0] sm:$0xff] %v615_v63  ;;  %872 = vst [vmem:[%s1279_s27 + $0x6f8] sm:$0xff] %v616_v0  ;;  %v621_v11 = vmax.f32 %v365_v8, 0.0  ;;  %v622_v12 = vmax.f32 %v366_v9, 0.0  ;;  %v368_v14 = vld [vmem:[%s1269_s30 + $0x738] sm:$0xff] }
  0xa8   : > { %873 = vst [vmem:[%s1279_s27 + $0x700] sm:$0xff] %v617_v1  ;;  %v623_v13 = vmax.f32 %v367_v10, 0.0  ;;  %v369_v15 = vld [vmem:[%s1269_s30 + $0x740] sm:$0xff]  ;;  %v370_v16 = vld [vmem:[%s1269_s30 + $0x748] sm:$0xff]  ;;  %874 = vst [vmem:[%s1279_s27 + $0x708] sm:$0xff] %v618_v5  ;;  %v624_v17 = vmax.f32 %v368_v14, 0.0 }
  0xa9   : > { %875 = vst [vmem:[%s1279_s27 + $0x710] sm:$0xff] %v619_v6  ;;  %876 = vst [vmem:[%s1279_s27 + $0x718] sm:$0xff] %v620_v7  ;;  %v625_v18 = vmax.f32 %v369_v15, 0.0  ;;  %v626_v19 = vmax.f32 %v370_v16, 0.0  ;;  %v371_v20 = vld [vmem:[%s1269_s30 + $0x750] sm:$0xff]  ;;  %v372_v21 = vld [vmem:[%s1269_s30 + $0x758] sm:$0xff] }
  0xaa   : > { %v373_v22 = vld [vmem:[%s1269_s30 + $0x760] sm:$0xff]  ;;  %877 = vst [vmem:[%s1279_s27 + $0x720] sm:$0xff] %v621_v11  ;;  %878 = vst [vmem:[%s1279_s27 + $0x728] sm:$0xff] %v622_v12  ;;  %v627_v23 = vmax.f32 %v371_v20, 0.0  ;;  %v628_v24 = vmax.f32 %v372_v21, 0.0  ;;  %v374_v26 = vld [vmem:[%s1269_s30 + $0x768] sm:$0xff] }
  0xab   : > { %879 = vst [vmem:[%s1279_s27 + $0x730] sm:$0xff] %v623_v13  ;;  %v629_v25 = vmax.f32 %v373_v22, 0.0  ;;  %v375_v27 = vld [vmem:[%s1269_s30 + $0x770] sm:$0xff]  ;;  %v376_v28 = vld [vmem:[%s1269_s30 + $0x778] sm:$0xff]  ;;  %880 = vst [vmem:[%s1279_s27 + $0x738] sm:$0xff] %v624_v17  ;;  %v630_v29 = vmax.f32 %v374_v26, 0.0 }
  0xac   : > { %881 = vst [vmem:[%s1279_s27 + $0x740] sm:$0xff] %v625_v18  ;;  %882 = vst [vmem:[%s1279_s27 + $0x748] sm:$0xff] %v626_v19  ;;  %v631_v30 = vmax.f32 %v375_v27, 0.0  ;;  %v632_v31 = vmax.f32 %v376_v28, 0.0  ;;  %v377_v32 = vld [vmem:[%s1269_s30 + $0x780] sm:$0xff]  ;;  %v378_v33 = vld [vmem:[%s1269_s30 + $0x788] sm:$0xff] }
  0xad   : > { %v379_v34 = vld [vmem:[%s1269_s30 + $0x790] sm:$0xff]  ;;  %883 = vst [vmem:[%s1279_s27 + $0x750] sm:$0xff] %v627_v23  ;;  %884 = vst [vmem:[%s1279_s27 + $0x758] sm:$0xff] %v628_v24  ;;  %v633_v35 = vmax.f32 %v377_v32, 0.0  ;;  %v634_v36 = vmax.f32 %v378_v33, 0.0  ;;  %v380_v38 = vld [vmem:[%s1269_s30 + $0x798] sm:$0xff] }
  0xae   : > { %885 = vst [vmem:[%s1279_s27 + $0x760] sm:$0xff] %v629_v25  ;;  %v635_v37 = vmax.f32 %v379_v34, 0.0  ;;  %v381_v39 = vld [vmem:[%s1269_s30 + $0x7a0] sm:$0xff]  ;;  %v382_v40 = vld [vmem:[%s1269_s30 + $0x7a8] sm:$0xff]  ;;  %886 = vst [vmem:[%s1279_s27 + $0x768] sm:$0xff] %v630_v29  ;;  %v636_v41 = vmax.f32 %v380_v38, 0.0 }
  0xaf   : > { %887 = vst [vmem:[%s1279_s27 + $0x770] sm:$0xff] %v631_v30  ;;  %888 = vst [vmem:[%s1279_s27 + $0x778] sm:$0xff] %v632_v31  ;;  %v637_v42 = vmax.f32 %v381_v39, 0.0  ;;  %v638_v43 = vmax.f32 %v382_v40, 0.0  ;;  %v383_v44 = vld [vmem:[%s1269_s30 + $0x7b0] sm:$0xff]  ;;  %v384_v45 = vld [vmem:[%s1269_s30 + $0x7b8] sm:$0xff] }
  0xb0   : > { %v385_v46 = vld [vmem:[%s1269_s30 + $0x7c0] sm:$0xff]  ;;  %889 = vst [vmem:[%s1279_s27 + $0x780] sm:$0xff] %v633_v35  ;;  %890 = vst [vmem:[%s1279_s27 + $0x788] sm:$0xff] %v634_v36  ;;  %v639_v47 = vmax.f32 %v383_v44, 0.0  ;;  %v640_v48 = vmax.f32 %v384_v45, 0.0  ;;  %v386_v50 = vld [vmem:[%s1269_s30 + $0x7c8] sm:$0xff] }
  0xb1   : > { %891 = vst [vmem:[%s1279_s27 + $0x790] sm:$0xff] %v635_v37  ;;  %v641_v49 = vmax.f32 %v385_v46, 0.0  ;;  %v387_v51 = vld [vmem:[%s1269_s30 + $0x7d0] sm:$0xff]  ;;  %v388_v52 = vld [vmem:[%s1269_s30 + $0x7d8] sm:$0xff]  ;;  %892 = vst [vmem:[%s1279_s27 + $0x798] sm:$0xff] %v636_v41  ;;  %v642_v53 = vmax.f32 %v386_v50, 0.0 }
  0xb2   : > { %893 = vst [vmem:[%s1279_s27 + $0x7a0] sm:$0xff] %v637_v42  ;;  %894 = vst [vmem:[%s1279_s27 + $0x7a8] sm:$0xff] %v638_v43  ;;  %v643_v54 = vmax.f32 %v387_v51, 0.0  ;;  %v644_v55 = vmax.f32 %v388_v52, 0.0  ;;  %v389_v56 = vld [vmem:[%s1269_s30 + $0x7e0] sm:$0xff]  ;;  %v390_v57 = vld [vmem:[%s1269_s30 + $0x7e8] sm:$0xff] }
  0xb3   : > { %v391_v58 = vld [vmem:[%s1269_s30 + $0x7f0] sm:$0xff]  ;;  %895 = vst [vmem:[%s1279_s27 + $0x7b0] sm:$0xff] %v639_v47  ;;  %896 = vst [vmem:[%s1279_s27 + $0x7b8] sm:$0xff] %v640_v48  ;;  %v645_v59 = vmax.f32 %v389_v56, 0.0  ;;  %v646_v60 = vmax.f32 %v390_v57, 0.0  ;;  %v392_v62 = vld [vmem:[%s1269_s30 + $0x7f8] sm:$0xff] }
  0xb4   : > { %897 = vst [vmem:[%s1279_s27 + $0x7c0] sm:$0xff] %v641_v49  ;;  %v647_v61 = vmax.f32 %v391_v58, 0.0  ;;  %898 = vst [vmem:[%s1279_s27 + $0x7c8] sm:$0xff] %v642_v53  ;;  %v648_v63 = vmax.f32 %v392_v62, 0.0  ;;  %s906_s10 = scalar_lea.sflag [#allocation4], %s1265_s23  ;;  %s1086_s3 = scalar_lea.vmem %s1793_s17, 32768 }
  0xb5   : > { %899 = vst [vmem:[%s1279_s27 + $0x7d0] sm:$0xff] %v643_v54  ;;  %900 = vst [vmem:[%s1279_s27 + $0x7d8] sm:$0xff] %v644_v55  ;;  %p1087_p11 = scmp.ne.s32.totalorder %s1793_s17, %s1086_s3  ;;  %p1853_p12 = scmp.ne.s32.totalorder %s1849_s18, 0 }
  0xb6   : > { %901 = vst [vmem:[%s1279_s27 + $0x7e0] sm:$0xff] %v645_v59  ;;  %902 = vst [vmem:[%s1279_s27 + $0x7e8] sm:$0xff] %v646_v60  ;;  %s1155_s4 = smov [#allocation5]  }
  0xb7   : > { %903 = vst [vmem:[%s1279_s27 + $0x7f0] sm:$0xff] %v647_v61  ;;  %904 = vst [vmem:[%s1279_s27 + $0x7f8] sm:$0xff] %v648_v63  ;;  %p1088_p13 = pnand %p1087_p11, %p1853_p12  ;;  %s1090_s5 = sshll.u32 %s1155_s4, 4  ;;  %s1091_s5 = int_to_ptr.vmem [resolvable:$false] %s1090_s5 }
  0xb8   : > { %s1092_s11 = scalar_lea.vmem %s1091_s5, 65536  ;;  %p1093_p5 = scmp.lt.s32.totalorder %s1793_s17, %s1091_s5 }
  0xb9   : > { %p1089_p4 = pneg %p1088_p13  ;;  %p1094_p7 = scmp.lt.s32.totalorder %s1092_s11, %s1086_s3 }
  0xbb   : > { %p1095_p8 = por %p1094_p7, %p1093_p5 }
  0xbd   : > { %p1096_p10 = pnand %p1095_p8, %p1089_p4 }
  0xbf   : > { %1099 = shalt.err (!%p1096_p10)
}
  0xc0   : > { %s1100_s13 = scalar_lea.hbm %s1789_s2, 32768  ;;  %s1104_s20 = scalar_lea.hbm %s1844_s1, 65536 }
  0xc1   : > { %p1101_p0 = scmp.ne.s32.totalorder %s1789_s2, %s1100_s13  ;;  %p1105_p1 = scmp.lt.s32.totalorder %s1789_s2, %s1844_s1 }
  0xc2   : > { %p1106_p3 = scmp.lt.s32.totalorder %s1104_s20, %s1100_s13 }
  0xc3   : > { %p1102_p2 = pnand %p1101_p0, %p1853_p12 }
  0xc4   : > { %p1107_p6 = por %p1106_p3, %p1105_p1 }
  0xc5   : > { %p1103_p9 = pneg %p1102_p2 }
  0xc7   : > { %p1108_p11 = pnand %p1107_p6, %p1103_p9 }
  0xc9   : > { %1111 = shalt.err (!%p1108_p11)
}
  0xca   : > { %s1156_s24 = smov 128   ;;  %s1157_s26 = smov 8  }
  0xcb   : > { %1010 = dma.vmem_to_hbm [thread:$0]  (%p1853_p12), %s1793_s17, 32768, %s1789_s2, %s906_s10, %s1156_s24, %s1156_s24, %s1157_s26  }
  0xcc PF: > { %s934_s30 = sand.u32 1, %s1138_s6   ;;  %p1854_p13 = scmp.ne.s32.totalorder %s1850_s19, 0 }
  0xcd   : > { %p1855_p4 = scmp.ge.s32.totalorder %s1150_s9, 2  ;;  %s935_s25 = scalar_lea.sflag [#allocation4], %s934_s30 }
  0xcf   : > { %p1017_p5 = pnand %p1855_p4, %p1854_p13 }
  0xd1   : > { %p1018_p7 = pneg %p1017_p5 }
  0xd3   : > { %1133 = dma.done.wait (%p1018_p7), %s935_s25, 32768  }
  0xd4   : > { %1135 = vsyncadd (%p1018_p7), %s935_s25, 4294934528  ;;  %p14_p8 = scmp.ge.s32.totalorder %s1193_s12, 4   ;;  %s1856_s6 = smov %s1142_s7 }
  0xd5   : > { %s1857_s7 = smov %s1146_s8  ;;  %s1858_s8 = smov %s1205_s15 }
  0xd6   : > { %s1859_s9 = smov %s1193_s12  ;;  %16 = sbr.rel (!%p14_p8) target bundleno = 5 (0x5), region = 69 }
  0xdb   :  { %940 = vsyncpa [#allocation3], 1 }
  0xdc   :  { %942 = vsyncpa [#allocation3 + $0x1], 1 }
  0xdd   :  { %943 = vsyncpa [#allocation4], 1 }
  0xde   :  { %945 = vsyncpa [#allocation4 + $0x1], 1 }

</bundles_post_ra>
